<compile_context>
chip_gen: v6e
topology: v6e:2x2x1
jax: 0.10.0
libtpu: 0.0.40
codegen_flags: <defaults>
</compile_context>

<pallas_src>
import jax
import jax.numpy as jnp
from jax.experimental import pallas as pl
from jax.experimental.pallas import tpu as pltpu


def _linear_add_relu_kernel(x_ref, c_ref, o_ref):
    # x (SMEM): (1, K)   c (VMEM): (K+1, N) = [W^T rows ; (bias + t)]   o: (1, N)
    K = x_ref.shape[1]
    # Single whole-tile load of the constant; rows selected at register level.
    c = c_ref[...]
    # Start from the folded (bias + t) row: (1, N).
    acc = c[K:K + 1, :]
    # K is tiny (2): unrolled scalar x vector multiply-adds — scalar rides the
    # sreg path, MAC stays purely in VPU slots, no MXU, no lane broadcasts.
    for k in range(K):
        acc = acc + x_ref[0, k] * c[k:k + 1, :]
    o_ref[...] = jnp.maximum(acc, 0.0).astype(o_ref.dtype)


def fold_constants(weight, bias, t):
    """Precompute the single (K+1, N) constant operand [W^T ; bias + t].

    Called ONCE at parameter-init time, outside the per-call path.
    """
    N, K = weight.shape
    assert bias.shape == (N,), bias.shape
    assert t.shape == (1, N), t.shape  # explicit, no silent reshape
    return jnp.concatenate(
        [weight.T.astype(jnp.float32),
         (bias.reshape(1, N) + t).astype(jnp.float32)],
        axis=0,
    )


def linear_add_relu(x, const):
    """x: (1, K) fp32, const: (K+1, N) fp32 -> relu(x @ W^T + b + t): (1, N)."""
    B, K = x.shape
    assert B == 1, "kernel written for the spec's batch=1 input"
    N = const.shape[1]
    assert const.shape == (K + 1, N), const.shape

    return pl.pallas_call(
        _linear_add_relu_kernel,
        out_shape=jax.ShapeDtypeStruct((B, N), jnp.float32),
        in_specs=[
            pl.BlockSpec(memory_space=pltpu.MemorySpace.SMEM),  # x: scalar reads
            pl.BlockSpec(memory_space=pltpu.MemorySpace.VMEM),  # folded constants
        ],
        out_specs=pl.BlockSpec(memory_space=pltpu.MemorySpace.VMEM),
    )(x, const)


# Single-launch forward: the pallas_call is the only op in the jitted program.
forward = jax.jit(linear_add_relu)


if __name__ == "__main__":
    key = jax.random.PRNGKey(0)
    k_x, k_w, k_b, k_t = jax.random.split(key, 4)

    in_features, out_features = 2, 6
    batch = 1

    # Deterministic "parameters" (matching nn.Linear(2, 6) shapes).
    weight = jax.random.normal(k_w, (out_features, in_features), jnp.float32) * 0.5
    bias = jax.random.normal(k_b, (out_features,), jnp.float32) * 0.1
    # Module-level constant t (see TODO above re: broadcast-compatible shape).
    t = jax.random.normal(k_t, (1, out_features), jnp.float32)

    # Fold constants ONCE at init time (not per call).
    const = fold_constants(weight, bias, t)

    # Input x1: (1, 2) as in the original program.
    x1 = jax.random.normal(k_x, (batch, in_features), jnp.float32)

    out = forward(x1, const)
    jax.block_until_ready(out)

    # Reference check in plain JAX.
    ref = jnp.maximum(x1 @ weight.T + bias + t, 0.0)
    assert out.shape == (batch, out_features)
    assert jnp.allclose(out, ref, atol=1e-5), (out, ref)

    print("KERNEL_OK")
</pallas_src>

<mosaic_0001>
module attributes {stable_mosaic.version = 11 : i64} {
  func.func @_linear_add_relu_kernel(%arg0: memref<1x2xf32, #tpu.memory_space<smem>>, %arg1: memref<3x6xf32, #tpu.memory_space<vmem>>, %arg2: memref<1x6xf32, #tpu.memory_space<vmem>>) attributes {dimension_semantics = [], scalar_prefetch = 0 : i64, scratch_operands = 0 : i64, tpu.core_type = #tpu.core_type<tc>} {
    %c0 = arith.constant 0 : index
    %c0_0 = arith.constant 0 : index
    %0 = vector.load %arg1[%c0, %c0_0] : memref<3x6xf32, #tpu.memory_space<vmem>>, vector<3x6xf32>
    %1 = vector.extract_strided_slice %0 {offsets = [2, 0], sizes = [1, 6], strides = [1, 1]} : vector<3x6xf32> to vector<1x6xf32>
    %c0_1 = arith.constant 0 : index
    %c0_2 = arith.constant 0 : index
    %2 = memref.load %arg0[%c0_1, %c0_2] : memref<1x2xf32, #tpu.memory_space<smem>>
    %3 = vector.extract_strided_slice %0 {offsets = [0, 0], sizes = [1, 6], strides = [1, 1]} : vector<3x6xf32> to vector<1x6xf32>
    %4 = vector.broadcast %2 : f32 to vector<1x6xf32>
    %5 = arith.mulf %4, %3 : vector<1x6xf32>
    %6 = arith.addf %1, %5 : vector<1x6xf32>
    %c0_3 = arith.constant 0 : index
    %c1 = arith.constant 1 : index
    %7 = memref.load %arg0[%c0_3, %c1] : memref<1x2xf32, #tpu.memory_space<smem>>
    %8 = vector.extract_strided_slice %0 {offsets = [1, 0], sizes = [1, 6], strides = [1, 1]} : vector<3x6xf32> to vector<1x6xf32>
    %9 = vector.broadcast %7 : f32 to vector<1x6xf32>
    %10 = arith.mulf %9, %8 : vector<1x6xf32>
    %11 = arith.addf %6, %10 : vector<1x6xf32>
    %cst = arith.constant 0.000000e+00 : f32
    %12 = vector.broadcast %cst : f32 to vector<1x6xf32>
    %13 = arith.maximumf %11, %12 : vector<1x6xf32>
    %c0_4 = arith.constant 0 : index
    %c0_5 = arith.constant 0 : index
    %14 = vector.load %arg2[%c0_4, %c0_5] : memref<1x6xf32, #tpu.memory_space<vmem>>, vector<1x6xf32>
    tpu.vector_store %arg2[%c0_4, %c0_5], %13 {strides = array<i32>} : memref<1x6xf32, #tpu.memory_space<vmem>>, vector<1x6xf32>,
    return
  }
}

</mosaic_0001>

<bundles_post_ra>
// kernel: linear_add_relu.1
= control target key start
LH: loop header
LB: loop body
LE: loop exit
PB: predicated region body
PF: predicated region fallthrough
CT: control target
= control target key end

     0   :  { %7 = vsyncpa [#allocation5], 0  ;;  %s154_s0 = inlined_call_operand.hbm [shape: f32[1,2], index: 0, kind: input, shape index: {}]   ;;  %s155_s1 = inlined_call_operand.hbm [shape: f32[3,6], index: 1, kind: input, shape index: {}]   ;;  %s156_s2 = inlined_call_operand.hbm [shape: f32[1,6], index: 2, kind: output, shape index: {}]  }
   0x1   :  { %8 = vsyncpa [#allocation3], 0 }
   0x2   :  { %9 = vsyncpa [#allocation4], 0  ;;  %s127_s9 = smov [#allocation2]   ;;  %s128_s12 = smov [#allocation6]  }
   0x3   :  { %17 = dma.hbm_to_smem %s154_s0, 16, %s127_s9, [#allocation5]  }
   0x4   :  { %s24_s13 = sshll.u32 %s128_s12, 4  ;;  %s25_s13 = int_to_ptr.vmem [resolvable:$true] %s24_s13 }
   0x5   :  { %s89_s14 = scalar_lea.vmem %s25_s13, 64  ;;  %p94_p1 = scmp.lt.s32.totalorder %s25_s13, %s25_s13 }
   0x6   :  { %p90_p0 = scmp.ne.s32.totalorder %s25_s13, %s89_s14  ;;  %p95_p2 = scmp.lt.s32.totalorder %s89_s14, %s89_s14 }
   0x8   :  { %p96_p3 = por %p95_p2, %p94_p1 }
   0xa   :  { %p97_p4 = pnand %p96_p3, %p90_p0 }
   0xc   :  { %100 = shalt.err (!%p97_p4)
}
   0xd   :  { %27 = dma.hbm_to_vmem [thread:$0]  %s155_s1, 64, %s25_s13, [#allocation3]  }
   0xe   :  { %121 = dma.done.wait [#allocation5], 16  }
   0xf   :  { %122 = vsyncadd [#allocation5], 4294967280 }
  0x10   :  { %123 = dma.done.wait [#allocation3], 64  }
  0x11   :  { %124 = vsyncadd [#allocation3], 4294967232 }
  0x12   :  { %34 = sfence }
  0x13   :  { %s36_s0 = sld [smem:[#allocation2]]  ;;  %v35_v0 = vld [vmem:[#allocation6] sm:$0x7]  ;;  %s129_s18 = smov [#allocation7]   ;;  %vm51_vm0 = vcmask 43010  }
  0x14   :  { %s69_s17 = sld [smem:[#allocation2 + $0x1]]  ;;  %s59_s19 = sshll.u32 %s129_s18, 4  ;;  %s60_s19 = int_to_ptr.vmem [resolvable:$true] %s59_s19 }
  0x15   :  { %s101_s1 = scalar_lea.vmem %s60_s19, 16  ;;  %s105_s20 = scalar_lea.vmem %s60_s19, 32 }
  0x16   :  { %p102_p5 = scmp.ne.s32.totalorder %s60_s19, %s101_s1  ;;  %p106_p6 = scmp.lt.s32.totalorder %s60_s19, %s60_s19 }
  0x17   :  { %p107_p7 = scmp.lt.s32.totalorder %s105_s20, %s101_s1 }
  0x19   :  { %v37_v1 = vstv %s36_s0  ;;  %p108_p8 = por %p107_p7, %p106_p6 }
  0x1a   :  { %v38_v2 = vmul.f32 %v37_v1, %v35_v0  ;;  %v44_v3 = vstv %s69_s17 }
  0x1b   :  { %v45_v4 = vmul.f32 %v44_v3, %v35_v0  ;;  %p109_p9 = pnand %p108_p8, %p102_p5 }
  0x1c   :  { %v40_v5 = vrot.slane %v38_v2, 6 }
  0x1d   :  { %v47_v6 = vrot.slane %v45_v4, 7 }
  0x1e   :  { %v42_v7 = vadd.f32 %v40_v5, %v35_v0 }
  0x20   :  { %v49_v8 = vadd.f32 %v47_v6, %v42_v7 }
  0x22   :  { %v50_v9 = vmax.f32 %v49_v8, 0.0 }
  0x24   :  { %52 = vst.msk [vmem:[#allocation7 - $0x2] sm:$0x4] %vm51_vm0, %v50_v9 }
  0x25   :  { %112 = shalt.err (!%p109_p9)
}
  0x26   :  { %62 = dma.vmem_to_hbm [thread:$0]  %s60_s19, 16, %s156_s2, [#allocation4]  }
  0x27   :  { %125 = dma.done.wait [#allocation4], 16  }
  0x28   :  { %126 = vsyncadd [#allocation4], 4294967280 }
  0x29   :  { %66 = vsyncpa [#allocation3], 1 }
  0x2a   :  { %67 = vsyncpa [#allocation4], 1 }
  0x2b   :  { %68 = vsyncpa [#allocation5], 1 }

</bundles_post_ra>
